<compile_context>
chip_gen: v5e
topology: v5e:2x2
jax: 0.10.0
libtpu: 0.0.40
codegen_flags: <defaults>
</compile_context>

<pallas_src>
import jax
import jax.numpy as jnp
from jax.experimental import pallas as pl
from jax.experimental.pallas import tpu as pltpu

# ----- module hyper-parameters (small, consistent with the nn.Module) -------
BATCH = 2
SEQ = 16            # sequence length L
EMBED = 32          # embed_size (= Conv1d in_channels)
KERNEL_SIZES = (3, 4, 5)
CHANNEL_NUMS = (8, 8, 8)
DROPOUT_RATE = 0.5  # eval/inference mode -> dropout is identity
K_MAX = max(KERNEL_SIZES)
C_TOTAL = sum(CHANNEL_NUMS)
C_PAD = ((C_TOTAL + 127) // 128) * 128   # lane-dense channel axis (padded cols are inert)
KE = K_MAX * EMBED                        # fused contraction depth (160)


# ----------------------------- kernel ---------------------------------------
def textcnn_kernel(p_ref, wf_ref, bf_ref, mask_ref, wd_ref, bd_ref, out_ref):
    """Fused conv(x3) + relu + global-max-pool + linear + sigmoid for one batch tile.

    p_ref   : (tile_b*L, KE)  bf16   im2col patches (rows = batch-major, seq-minor)
    wf_ref  : (KE, C_PAD)     bf16   fused conv weights (zero-padded taps / channels)
    bf_ref  : (1, C_PAD)      f32    fused conv bias
    mask_ref: (L, C_PAD)      f32    0 at valid conv positions, -inf otherwise
    wd_ref  : (1, C_PAD)      f32    decoder weight row (zero on padded channels)
    bd_ref  : (1, 1)          f32    decoder bias (SMEM)
    out_ref : (1, tile_b)     f32    lane-dense row of sigmoid outputs
    """
    L = mask_ref.shape[0]
    tb_l, _ = p_ref.shape
    tile_b = tb_l // L
    c_pad = wf_ref.shape[1]

    # One big-M matmul covers all conv branches, all taps, all rows of the tile.
    # bf16 operands, f32 accumulate (halves the dominant DMA bytes; MXU-native on v6e/v7x;
    # on v5e the 160-deep contraction is 2 MXU passes -- expected, don't split further).
    y = jnp.dot(p_ref[...], wf_ref[...],
                preferred_element_type=jnp.float32)          # (tile_b*L, C_PAD) f32

    # Sublane-axis split (L = 16 is a multiple of 8 -> layout compatible).
    y = y.reshape(tile_b, L, c_pad)

    # -inf mask invalidates positions past each branch's conv output length, then
    # global max pool over the sequence axis. Conv bias is constant over L, so it is
    # added after the pool; ReLU commutes with max, so it is applied after as well.
    pooled = jnp.max(y + mask_ref[...][None, :, :], axis=1)  # (tile_b, C_PAD)
    pooled = pooled + bf_ref[...]                            # conv bias (post-pool)
    enc = jnp.maximum(pooled, 0.0)                           # ReLU

    # dropout: eval/inference mode => identity (no RNG masking).
    # Decoder as (1, C) . (tile_b, C)^T so the result is already a lane-dense
    # (1, tile_b) row -- avoids a width-1 masked store on the output path.
    logits = jax.lax.dot_general(
        wd_ref[...], enc,
        dimension_numbers=(((1,), (1,)), ((), ())),
        preferred_element_type=jnp.float32) + bd_ref[0, 0]   # (1, tile_b)
    out_ref[...] = jax.nn.sigmoid(logits)


# ----------------------------- wrapper ---------------------------------------
def _fuse_params(params):
    """Pack the 3 conv branches into one (KE, C_PAD) weight, fused bias, a -inf
    validity mask over conv positions, and the decoder as a lane-dense row vector.
    Channels are zero-padded to C_PAD=128: padded channels have zero conv weight/bias,
    an all-valid mask (so they pool to 0, never -inf) and zero decoder weight."""
    conv_params = params[:-1]
    wd, bd = params[-1]
    w_cols, b_cols, lout_cols = [], [], []
    for (w, b), k, c in zip(conv_params, KERNEL_SIZES, CHANNEL_NUMS):
        wp = jnp.pad(w, ((0, K_MAX - k), (0, 0), (0, 0)))        # zero-pad extra taps
        w_cols.append(wp.reshape(KE, c))                         # (KE, c), row = j*E+e
        b_cols.append(b.reshape(1, c))
        lout_cols.append(jnp.full((1, c), SEQ - k + 1, jnp.int32))
    pad_c = C_PAD - C_TOTAL
    w_cols.append(jnp.zeros((KE, pad_c), jnp.float32))
    b_cols.append(jnp.zeros((1, pad_c), jnp.float32))
    lout_cols.append(jnp.full((1, pad_c), SEQ, jnp.int32))       # all-valid -> pools to 0
    w_fused = jnp.concatenate(w_cols, axis=1)                    # (KE, C_PAD)
    b_fused = jnp.concatenate(b_cols, axis=1)                    # (1, C_PAD)
    lout = jnp.concatenate(lout_cols, axis=1)                    # (1, C_PAD)
    t = jnp.arange(SEQ, dtype=jnp.int32)[:, None]                # (L, 1)
    mask = jnp.where(t < lout, 0.0, -jnp.inf).astype(jnp.float32)  # (L, C_PAD)
    wd_vec = jnp.pad(wd.reshape(1, C_TOTAL),
                     ((0, 0), (0, pad_c))).astype(jnp.float32)   # (1, C_PAD)
    bd_s = bd.reshape(1, 1).astype(jnp.float32)                  # decoder bias scalar
    return w_fused, b_fused, mask, wd_vec, bd_s


def _im2col(x):
    """(B, L, E) -> (B, L, KE) patches; patches[b,t,j*E+e] = x[b,t+j,e].
    Pure layout plumbing, done in XLA outside the kernel."""
    B, L, E = x.shape
    xp = jnp.pad(x, ((0, 0), (0, K_MAX - 1), (0, 0)))
    return jnp.concatenate([xp[:, j:j + L, :] for j in range(K_MAX)], axis=-1)


def textcnn_forward(x, params, *, tile_b=None):
    B, L, E = x.shape
    assert (L, E) == (SEQ, EMBED)
    # -inf mask + post-pool ReLU needs every branch to have >=1 valid position.
    assert L >= K_MAX, "SEQ must be >= max kernel size"

    w_fused, b_fused, mask, wd_vec, bd_s = _fuse_params(params)
    # bf16 MXU operands (f32 accumulate in-kernel); everything else stays f32.
    patches = _im2col(x).reshape(B * L, KE).astype(jnp.bfloat16)   # (B*L, KE)
    w_bf16 = w_fused.astype(jnp.bfloat16)

    if tile_b is None:
        # Toy batch: single tile.  For realistic B pick tile_b (multiple of 8) so that
        # grid = cdiv(B, tile_b) >= 2 (>= 8 on v7x so both TensorCores get work and DMA
        # double-buffers), and so the double-buffered bf16 patches tile
        # (~tile_b * 16 * 256 lanes * 2 B) fits scoped VMEM:
        #   v7x (64 MiB VMEM):  tile_b ~ 512-1024;   v5e/v6e (128 MiB): ~2x that.
        tile_b = B if B <= 256 else 256
    num_tiles = pl.cdiv(B, tile_b)

    # Explicit VMEM budget with headroom (patches tile is lane-padded 160 -> 256 bf16).
    patch_tile_bytes = tile_b * L * 256 * 2
    vmem_limit = int(min(100 * 2**20, max(16 * 2**20, 4 * patch_tile_bytes + (4 << 20))))

    cost = pl.CostEstimate(
        flops=int(2 * B * L * KE * C_PAD + 2 * B * C_PAD),
        transcendentals=int(B),
        bytes_accessed=int(patches.size * 2 + w_bf16.size * 2
                           + (b_fused.size + mask.size + wd_vec.size + 1) * 4
                           + num_tiles * tile_b * 4),
    )

    out_rows = pl.pallas_call(
        textcnn_kernel,
        out_shape=jax.ShapeDtypeStruct((num_tiles, tile_b), jnp.float32),
        grid=(num_tiles,),
        in_specs=[
            pl.BlockSpec((tile_b * L, KE), lambda i: (i, 0)),       # im2col patches (bf16)
            pl.BlockSpec((KE, C_PAD), lambda i: (0, 0)),            # fused conv weight (bf16)
            pl.BlockSpec((1, C_PAD), lambda i: (0, 0)),             # fused conv bias (f32)
            pl.BlockSpec((L, C_PAD), lambda i: (0, 0)),             # -inf validity mask (f32)
            pl.BlockSpec((1, C_PAD), lambda i: (0, 0)),             # decoder weight row (f32)
            pl.BlockSpec(memory_space=pltpu.MemorySpace.SMEM),      # decoder bias scalar
        ],
        out_specs=pl.BlockSpec((1, tile_b), lambda i: (i, 0)),      # lane-dense logits row
        compiler_params=pltpu.CompilerParams(
            dimension_semantics=("parallel",),
            vmem_limit_bytes=vmem_limit),
        cost_estimate=cost,
    )(patches, w_bf16, b_fused, mask, wd_vec, bd_s)

    # (num_tiles, tile_b) lane-dense rows -> (B, 1); padded tail rows (if any) sliced off.
    return out_rows.reshape(num_tiles * tile_b, 1)[:B]


# ----------------------------- reference -------------------------------------
def reference_forward(x, params):
    """Pure-JAX reference replicating the PyTorch forward semantics."""
    (w3, b3), (w4, b4), (w5, b5), (wd, bd) = params
    x_ncw = jnp.transpose(x, (0, 2, 1))          # permute(0, 2, 1) -> (B, E, L)
    encs = []
    for (w, b) in ((w3, b3), (w4, b4), (w5, b5)):
        # our storage (k, E, C) -> torch Conv1d weight (C_out, C_in, k)
        w_oiw = jnp.transpose(w, (2, 1, 0))
        y = jax.lax.conv_general_dilated(
            x_ncw, w_oiw, window_strides=(1,), padding='VALID',
            dimension_numbers=('NCH', 'OIH', 'NCH'))
        y = y + b.reshape(1, -1, 1)
        y = jnp.maximum(y, 0.0)
        encs.append(jnp.max(y, axis=2))          # GlobalMaxPool1d + squeeze(-1)
    enc = jnp.concatenate(encs, axis=1)
    return jax.nn.sigmoid(enc @ wd + bd)         # dropout = identity (eval)


def init_params(key):
    params = []
    ks = jax.random.split(key, 2 * len(KERNEL_SIZES) + 2)
    i = 0
    for k, c in zip(KERNEL_SIZES, CHANNEL_NUMS):
        w = 0.1 * jax.random.normal(ks[i], (k, EMBED, c), jnp.float32); i += 1
        b = 0.1 * jax.random.normal(ks[i], (1, c), jnp.float32); i += 1
        params.append((w, b))
    wd = 0.1 * jax.random.normal(ks[i], (C_TOTAL, 1), jnp.float32); i += 1
    bd = 0.1 * jax.random.normal(ks[i], (1, 1), jnp.float32)
    params.append((wd, bd))
    return params


if __name__ == "__main__":
    key = jax.random.PRNGKey(0)
    kx, kp = jax.random.split(key)
    x = jax.random.normal(kx, (BATCH, SEQ, EMBED), jnp.float32)
    params = init_params(kp)

    out = jax.block_until_ready(textcnn_forward(x, params))
    ref = jax.block_until_ready(reference_forward(x, params))

    assert out.shape == (BATCH, 1), out.shape
    # bf16 MXU operands (f32 accumulate) -> loosened tolerance vs the all-f32 version.
    assert jnp.allclose(out, ref, atol=2e-2, rtol=2e-2), (out, ref)
    print("KERNEL_OK")
</pallas_src>

<mosaic_0001>
module attributes {stable_mosaic.version = 11 : i64} {
  func.func @textcnn_kernel(%arg0: i32, %arg1: memref<32x160xbf16, #tpu.memory_space<vmem>>, %arg2: memref<160x128xbf16, #tpu.memory_space<vmem>>, %arg3: memref<1x128xf32, #tpu.memory_space<vmem>>, %arg4: memref<16x128xf32, #tpu.memory_space<vmem>>, %arg5: memref<1x128xf32, #tpu.memory_space<vmem>>, %arg6: memref<1x1xf32, #tpu.memory_space<smem>>, %arg7: memref<1x2xf32, #tpu.memory_space<vmem>>) attributes {dimension_semantics = [#tpu.dimension_semantics<parallel>], iteration_bounds = array<i64: 1>, scalar_prefetch = 0 : i64, scratch_operands = 0 : i64, tpu.core_type = #tpu.core_type<tc>, window_params = [{transform_indices = @transform_0, window_bounds = array<i64: 32, 160>}, {pipeline_mode = #tpu.pipeline_mode<synchronous>, transform_indices = @transform_1, window_bounds = array<i64: 160, 128>}, {pipeline_mode = #tpu.pipeline_mode<synchronous>, transform_indices = @transform_2, window_bounds = array<i64: 1, 128>}, {pipeline_mode = #tpu.pipeline_mode<synchronous>, transform_indices = @transform_3, window_bounds = array<i64: 16, 128>}, {pipeline_mode = #tpu.pipeline_mode<synchronous>, transform_indices = @transform_4, window_bounds = array<i64: 1, 128>}, {transform_indices = @transform_5, window_bounds = array<i64: 1, 1>}, {transform_indices = @transform_6, window_bounds = array<i64: 1, 2>}]} {
    %c0 = arith.constant 0 : index
    %c0_0 = arith.constant 0 : index
    %0 = vector.load %arg1[%c0, %c0_0] : memref<32x160xbf16, #tpu.memory_space<vmem>>, vector<32x160xbf16>
    %c0_1 = arith.constant 0 : index
    %c0_2 = arith.constant 0 : index
    %1 = vector.load %arg2[%c0_1, %c0_2] : memref<160x128xbf16, #tpu.memory_space<vmem>>, vector<160x128xbf16>
    %cst = arith.constant dense<0.000000e+00> : vector<32x128xf32>
    %2 = tpu.matmul %0, %1, %cst {dimension_numbers = #tpu.dot_dimension_numbers<[1], [0], [0], [1], [0, 0, 1, 1], [], []>} : vector<32x160xbf16>, vector<160x128xbf16>, vector<32x128xf32> -> vector<32x128xf32>
    %3 = vector.shape_cast %2 : vector<32x128xf32> to vector<2x16x128xf32>
    %c0_3 = arith.constant 0 : index
    %c0_4 = arith.constant 0 : index
    %4 = vector.load %arg4[%c0_3, %c0_4] : memref<16x128xf32, #tpu.memory_space<vmem>>, vector<16x128xf32>
    %5 = vector.shape_cast %4 : vector<16x128xf32> to vector<1x16x128xf32>
    %6 = vector.broadcast %5 : vector<1x16x128xf32> to vector<2x16x128xf32>
    %7 = arith.addf %3, %6 : vector<2x16x128xf32>
    %cst_5 = arith.constant dense<0xFF800000> : vector<2x128xf32>
    %8 = vector.multi_reduction <maximumf>, %7, %cst_5 [1] : vector<2x16x128xf32> to vector<2x128xf32>
    %c0_6 = arith.constant 0 : index
    %c0_7 = arith.constant 0 : index
    %9 = vector.load %arg3[%c0_6, %c0_7] : memref<1x128xf32, #tpu.memory_space<vmem>>, vector<1x128xf32>
    %10 = vector.broadcast %9 : vector<1x128xf32> to vector<2x128xf32>
    %11 = arith.addf %8, %10 : vector<2x128xf32>
    %cst_8 = arith.constant 0.000000e+00 : f32
    %12 = vector.broadcast %cst_8 : f32 to vector<2x128xf32>
    %13 = arith.maximumf %11, %12 : vector<2x128xf32>
    %c0_9 = arith.constant 0 : index
    %c0_10 = arith.constant 0 : index
    %14 = vector.load %arg5[%c0_9, %c0_10] : memref<1x128xf32, #tpu.memory_space<vmem>>, vector<1x128xf32>
    %cst_11 = arith.constant dense<0.000000e+00> : vector<1x2xf32>
    %15 = tpu.matmul %14, %13, %cst_11 {dimension_numbers = #tpu.dot_dimension_numbers<[1], [1], [0], [0], [0, 0, 1, 0], [], []>} : vector<1x128xf32>, vector<2x128xf32>, vector<1x2xf32> -> vector<1x2xf32>
    %c0_12 = arith.constant 0 : index
    %c0_13 = arith.constant 0 : index
    %16 = memref.load %arg6[%c0_12, %c0_13] : memref<1x1xf32, #tpu.memory_space<smem>>
    %17 = vector.broadcast %16 : f32 to vector<1x2xf32>
    %18 = arith.addf %15, %17 : vector<1x2xf32>
    %19 = arith.negf %18 : vector<1x2xf32>
    %20 = math.exp %19 : vector<1x2xf32>
    %cst_14 = arith.constant 1.000000e+00 : f32
    %21 = vector.broadcast %cst_14 : f32 to vector<1x2xf32>
    %22 = arith.addf %21, %20 : vector<1x2xf32>
    %23 = arith.divf %21, %22 : vector<1x2xf32>
    %c0_15 = arith.constant 0 : index
    %c0_16 = arith.constant 0 : index
    %24 = vector.load %arg7[%c0_15, %c0_16] : memref<1x2xf32, #tpu.memory_space<vmem>>, vector<1x2xf32>
    tpu.vector_store %arg7[%c0_15, %c0_16], %23 {strides = array<i32>} : memref<1x2xf32, #tpu.memory_space<vmem>>, vector<1x2xf32>,
    return
  }
  func.func @transform_0(%arg0: i32) -> (i32, i32) {
    %c0_i32 = arith.constant 0 : i32
    %c0_i32_0 = arith.constant 0 : i32
    return %arg0, %c0_i32 : i32, i32
  }
  func.func @transform_1(%arg0: i32) -> (i32, i32) {
    %c0_i32 = arith.constant 0 : i32
    %c0_i32_0 = arith.constant 0 : i32
    %c0_i32_1 = arith.constant 0 : i32
    return %c0_i32, %c0_i32_0 : i32, i32
  }
  func.func @transform_2(%arg0: i32) -> (i32, i32) {
    %c0_i32 = arith.constant 0 : i32
    %c0_i32_0 = arith.constant 0 : i32
    %c0_i32_1 = arith.constant 0 : i32
    return %c0_i32, %c0_i32_0 : i32, i32
  }
  func.func @transform_3(%arg0: i32) -> (i32, i32) {
    %c0_i32 = arith.constant 0 : i32
    %c0_i32_0 = arith.constant 0 : i32
    %c0_i32_1 = arith.constant 0 : i32
    return %c0_i32, %c0_i32_0 : i32, i32
  }
  func.func @transform_4(%arg0: i32) -> (i32, i32) {
    %c0_i32 = arith.constant 0 : i32
    %c0_i32_0 = arith.constant 0 : i32
    %c0_i32_1 = arith.constant 0 : i32
    return %c0_i32, %c0_i32_0 : i32, i32
  }
  func.func @transform_5(%arg0: i32) -> (i32, i32) {
    %c0_i32 = arith.constant 0 : i32
    %c0_i32_0 = arith.constant 0 : i32
    %c0_i32_1 = arith.constant 0 : i32
    return %c0_i32, %c0_i32_0 : i32, i32
  }
  func.func @transform_6(%arg0: i32) -> (i32, i32) {
    %c0_i32 = arith.constant 0 : i32
    %c0_i32_0 = arith.constant 0 : i32
    return %arg0, %c0_i32 : i32, i32
  }
}

</mosaic_0001>

<bundles_post_ra>
// kernel: tpu_custom_call.1
= control target key start
LH: loop header
LB: loop body
LE: loop exit
PB: predicated region body
PF: predicated region fallthrough
CT: control target
= control target key end

     0   :  { %12 = vsyncpa [#allocation4], 0  ;;  %s578_s0 = inlined_call_operand.hbm [shape: bf16[32,160], index: 0, kind: input, shape index: {}]   ;;  %s579_s1 = inlined_call_operand.hbm [shape: bf16[160,128], index: 1, kind: input, shape index: {}]   ;;  %s580_s2 = inlined_call_operand.vmem [shape: f32[1,128], index: 2, kind: input, shape index: {}]   ;;  %s581_s3 = inlined_call_operand.hbm [shape: f32[16,128], index: 3, kind: input, shape index: {}]   ;;  %s582_s4 = inlined_call_operand.vmem [shape: f32[1,128], index: 4, kind: input, shape index: {}]   ;;  %s583_s5 = inlined_call_operand.<no memory space> [shape: f32[1,1], index: 5, kind: input, shape index: {}]   ;;  %s584_s6 = inlined_call_operand.hbm [shape: f32[1,2], index: 6, kind: output, shape index: {}]  }
   0x1   :  { %13 = vsyncpa [#allocation7], 0  ;;  %s32_s23 = sshll.u32 %s579_s1, 4  ;;  %s33_s23 = int_to_ptr.hbm [resolvable:$true] %s32_s23 }
   0x2   :  { %14 = vsyncpa [#allocation5], 0  ;;  %s512_s24 = smov [#allocation6]   ;;  %s19_s28 = sshll.u32 %s578_s0, 4  ;;  %s20_s28 = int_to_ptr.hbm [resolvable:$true] %s19_s28 }
   0x3   :  { %s34_s25 = sshll.u32 %s512_s24, 4  ;;  %s513_s29 = smov 64   ;;  %s35_s25 = int_to_ptr.vmem [resolvable:$true] %s34_s25 }
   0x4   :  { %s514_s30 = smov 4   ;;  %s515_s7 = smov [#allocation3]  }
   0x5   :  { %40 = dma.hbm_to_vmem [thread:$0]  %s33_s23, 1280, %s35_s25, [#allocation7], %s513_s29, %s513_s29, %s514_s30  }
   0x6   :  { %s21_s8 = sshll.u32 %s515_s7, 4  ;;  %s516_s9 = smov 128   ;;  %s22_s8 = int_to_ptr.vmem [resolvable:$true] %s21_s8 }
   0x7   :  { %s517_s10 = smov 8   ;;  %s47_s12 = sshll.u32 %s581_s3, 4  ;;  %s48_s12 = int_to_ptr.hbm [resolvable:$true] %s47_s12 }
   0x8   :  { %27 = dma.hbm_to_vmem [thread:$0]  %s20_s28, 512, %s22_s8, [#allocation4], %s516_s9, %s516_s9, %s517_s10  }
   0x9   :  { %s518_s13 = smov [#allocation8]  }
   0xa   :  { %s49_s14 = sshll.u32 %s518_s13, 4  ;;  %s50_s14 = int_to_ptr.vmem [resolvable:$true] %s49_s14 }
   0xb   :  { %55 = dma.hbm_to_vmem [thread:$0]  %s48_s12, 256, %s50_s14, [#allocation7], %s516_s9, %s516_s9, %s517_s10  }
   0xc   :  { %506 = dma.done.wait [#allocation4], 512  }
   0xd   :  { %507 = vsyncadd [#allocation4], 4294966784 }
   0xe   :  { %508 = dma.done.wait [#allocation7], 1536  }
   0xf   :  { %509 = vsyncadd [#allocation7], 4294965760  ;;  %v386_v0 = vld [vmem:[#allocation6 + $0x38] sm:$0xff]  ;;  %v388_v1 = vld [vmem:[#allocation6 + $0x48] sm:$0xff]  ;;  %vm175_vm0 = vcmask 261120   ;;  %vm254_vm1 = vcmask 1041409   ;;  %v250_v62 = vstv %s583_s5 }
  0x10   :  { %182 = vmatpush.bf16.msra.mxu0 %v386_v0  ;;  %389 = vmatpush.bf16.msra.mxu3 %v386_v0  ;;  %v385_v2 = vld [vmem:[#allocation6 + $0x30] sm:$0xff]  ;;  %v387_v3 = vld [vmem:[#allocation6 + $0x40] sm:$0xff]  ;;  %v320_v5 = vld [vmem:[#allocation3 + $0x8] sm:$0xf0]  ;;  %s305_s5 = sshll.u32 %s584_s6, 4  ;;  %vm296_vm5 = vcmask 8192   ;;  %s306_s5 = int_to_ptr.hbm [resolvable:$true] %s305_s5 }
  0x11   :  { %207 = vmatpush.bf16.msra.mxu1 %v388_v1  ;;  %v375_v4 = vld [vmem:[#allocation3 + $0x4] sm:$0xf]  ;;  %v384_v6 = vld [vmem:[#allocation6 + $0x28] sm:$0xff]  ;;  %v382_v9 = vld [vmem:[#allocation6 + $0x18] sm:$0xff] }
  0x12   :  { %v323_v7 = vor.u32 %v375_v4, %v320_v5  ;;  %v383_v8 = vld [vmem:[#allocation6 + $0x20] sm:$0xff]  ;;  %v381_v10 = vld [vmem:[#allocation6 + $0x10] sm:$0xff]  ;;  %v328_v12 = vld [vmem:[#allocation3 + $0x18] sm:$0xf0] }
  0x13   :  { %v377_v11 = vld [vmem:[#allocation3 + $0x14] sm:$0xf]  ;;  %v380_v13 = vld [vmem:[#allocation6 + $0x8] sm:$0xff]  ;;  %v379_v15 = vld [vmem:[#allocation6] sm:$0xff] }
  0x14   :  { %183 = vmatpush.bf16.msra.mxu0 %v385_v2  ;;  %390 = vmatpush.bf16.msra.mxu3 %v385_v2  ;;  %v331_v14 = vor.u32 %v377_v11, %v328_v12  ;;  %v318_v16 = vld [vmem:[#allocation3] sm:$0xf]  ;;  %v376_v17 = vld [vmem:[#allocation3 + $0x4] sm:$0xf0]  ;;  %v326_v18 = vld [vmem:[#allocation3 + $0x10] sm:$0xf] }
  0x15   :  { %208 = vmatpush.bf16.msra.mxu1 %v387_v3  ;;  %v378_v19 = vld [vmem:[#allocation3 + $0x14] sm:$0xf0]  ;;  %v319_v20 = vor.u32 %v376_v17, %v318_v16  ;;  %v220_v28 = vld [vmem:[#allocation8] sm:$0xff]  ;;  %v405_v53 = vld [vmem:[%s580_s2] ss:$0 sm:$0xff]  ;;  %s519_s2 = smov [#allocation9]  }
  0x16   :  { %v327_v21 = vor.u32 %v378_v19, %v326_v18  ;;  %v221_v30 = vld [vmem:[#allocation8 + $0x8] sm:$0xff]  ;;  %v248_v61 = vld [vmem:[%s582_s4] sm:$0x1]  ;;  %s303_s4 = sshll.u32 %s519_s2, 4  ;;  %s304_s4 = int_to_ptr.vmem [resolvable:$true] %s303_s4 }
  0x18   :  { %184 = vmatpush.bf16.msra.mxu0 %v384_v6  ;;  %391 = vmatpush.bf16.msra.mxu3 %v384_v6 }
  0x19   :  { %372 = vmatmul.msk.bf16.vlgmr.msra.gmra.mxu1 %vm175_vm0, %v323_v7 }
  0x1c   :  { %185 = vmatpush.bf16.msra.mxu0 %v383_v8  ;;  %392 = vmatpush.bf16.msra.mxu3 %v383_v8 }
  0x20   :  { %186 = vmatpush.bf16.msra.mxu0 %v382_v9  ;;  %393 = vmatpush.bf16.msra.mxu3 %v382_v9 }
  0x24   :  { %187 = vmatpush.bf16.msra.mxu0 %v381_v10  ;;  %394 = vmatpush.bf16.msra.mxu3 %v381_v10 }
  0x28   :  { %188 = vmatpush.bf16.msra.mxu0 %v380_v13  ;;  %395 = vmatpush.bf16.msra.mxu3 %v380_v13 }
  0x29   :  { %373 = vmatmul.msk.bf16.gmra.mxu1 %vm175_vm0, %v331_v14 }
  0x2c   :  { %189 = vmatpush.bf16.msra.mxu0 %v379_v15  ;;  %396 = vmatpush.bf16.msra.mxu3 %v379_v15 }
  0x2f   :  { %190 = vmatmul.bf16.vlgmr.msra.gmra.mxu0 %v319_v20  ;;  %195 = vmatmul.bf16.vlgmr.msra.gmra.mxu3 %v327_v21 }
  0x96   :  { %v210_v22 = vpop.f32.mrf.mxu1 }
  0x9e   :  { %v212_v23 = vpop.f32.mrf.mxu1 }
  0xa6   :  { %v215_v25 = vpop.f32.mrf.mxu1 }
  0xac   :  { %v191_v24 = vpop.f32.mrf.mxu0 }
  0xad   :  { %v211_v27 = vadd.f32 %v210_v22, %v191_v24 }
  0xae   :  { %v217_v36 = vpop.f32.mrf.mxu1 }
  0xaf   :  { %v222_v32 = vadd.f32 %v220_v28, %v211_v27 }
  0xb2   :  { %v196_v26 = vpop.f32.mrf.mxu3 }
  0xb3   :  { %v216_v34 = vadd.f32 %v215_v25, %v196_v26 }
  0xb4   :  { %v193_v29 = vpop.f32.mrf.mxu0 }
  0xb5   :  { %v213_v31 = vadd.f32 %v212_v23, %v193_v29  ;;  %v224_v40 = vadd.f32 %v220_v28, %v216_v34 }
  0xb7   :  { %v223_v33 = vadd.f32 %v221_v30, %v213_v31 }
  0xb9   :  { %v226_v35 = vmax.f32 %v222_v32, %v223_v33 }
  0xba   :  { %v198_v37 = vpop.f32.mrf.mxu3 }
  0xbb   :  { %v227_v38 = vrot.slane %v226_v35, 4  ;;  %v218_v39 = vadd.f32 %v217_v36, %v198_v37 }
  0xbd   :  { %v228_v41 = vmax.f32 %v226_v35, %v227_v38  ;;  %v225_v42 = vadd.f32 %v221_v30, %v218_v39 }
  0xbf   :  { %v229_v43 = vrot.slane %v228_v41, 2  ;;  %v233_v44 = vmax.f32 %v224_v40, %v225_v42 }
  0xc1   :  { %v230_v45 = vmax.f32 %v228_v41, %v229_v43  ;;  %v234_v46 = vrot.slane %v233_v44, 4 }
  0xc3   :  { %v235_v47 = vmax.f32 %v233_v44, %v234_v46  ;;  %v231_v49 = vrot.slane %v230_v45, 1 }
  0xc5   :  { %v236_v48 = vrot.slane %v235_v47, 2  ;;  %v232_v51 = vmax.f32 %v230_v45, %v231_v49 }
  0xc7   :  { %v237_v50 = vmax.f32 %v235_v47, %v236_v48  ;;  %v244_v55 = vadd.f32 %v405_v53, %v232_v51 }
  0xc9   :  { %v238_v52 = vrot.slane %v237_v50, 1  ;;  %v246_v58 = vmax.f32 %v244_v55, 0.0 }
  0xcb   :  { %v239_v54 = vmax.f32 %v237_v50, %v238_v52 }
  0xcd   :  { %v245_v56 = vadd.f32 %v405_v53, %v239_v54 }
  0xcf   :  { %v247_v57 = vmax.f32 %v245_v56, 0.0 }
  0xd1   :  { %v253_v59 = vrot.slane %v247_v57, 7 }
  0xd3   :  { %v255_v60 = vsel %vm254_vm1, %v253_v59, %v246_v58 }
  0xd4   :  { %272 = vmatpush.xpose.msra.mxu2 %v255_v60 }
  0xd7   :  { %273 = vmatmul.f32.vlgmr.msra.gmra.mxu2 %v248_v61 }
 0x15a   :  { %v274_v63 = vpop.f32.mrf.mxu2 }
 0x15b   :  { %v275_v0 = vadd.f32 %v274_v63, %v250_v62 }
 0x15d   :  { %v374_v1 = vmul.f32 -1.442695, %v275_v0 }
 0x15f   :  { %406 = vpow2.f32 %v374_v1 }
 0x165   :  { %v407_v2 = vpop.eup %406 }
 0x166   :  { %v280_v3 = vadd.f32 1.0, %v407_v2 }
 0x168   :  { %408 = vrcp.f32 %v280_v3  ;;  %v292_v7 = vand.u32 2147483648, %v280_v3  ;;  %v290_v9 = vand.u32 2147483647, %v280_v3  ;;  %vm286_vm3 = vweird.f32 %v280_v3 }
 0x16a   :  { %v293_v11 = vor.u32 1.1754944e-38, %v292_v7  ;;  %vm291_vm6 = vcmp.eq.f32.partialorder %v290_v9, 8.507059e+37 }
 0x16e   :  { %v409_v4 = vpop.eup %408 }
 0x16f   :  { %v282_v5 = vmul.f32 %v409_v4, %v280_v3  ;;  %vm287_vm2 = vweird.f32 %v409_v4 }
 0x170   :  { %vm288_vm4 = vmor %vm286_vm3, %vm287_vm2 }
 0x171   :  { %v283_v6 = vsub.f32 1.0, %v282_v5 }
 0x173   :  { %v284_v8 = vmul.f32 %v409_v4, %v283_v6 }
 0x175   :  { %v285_v10 = vadd.f32 %v409_v4, %v284_v8 }
 0x177   :  { %v289_v12 = vsel %vm288_vm4, %v409_v4, %v285_v10 }
 0x178   :  { %v294_v13 = vsel %vm291_vm6, %v293_v11, %v289_v12 }
 0x179   :  { %297 = vst.msk [vmem:[#allocation9] sm:$0x1] %vm296_vm5, %v294_v13 }
 0x17a   :  { %308 = dma.vmem_to_hbm [thread:$0]  %s304_s4, 16, %s306_s5, [#allocation5]  }
 0x17b   :  { %510 = dma.done.wait [#allocation5], 16  }
 0x17c   :  { %511 = vsyncadd [#allocation5], 4294967280 }
 0x17d   :  { %313 = vsyncpa [#allocation4], 1 }
 0x17e   :  { %314 = vsyncpa [#allocation7], 1 }
 0x17f   :  { %315 = vsyncpa [#allocation5], 1 }

</bundles_post_ra>
